<compile_context>
chip_gen: v6e
topology: v6e:2x2x1
jax: 0.10.0
libtpu: 0.0.40
codegen_flags: <defaults>
</compile_context>

<pallas_src>
import functools

import jax
import jax.numpy as jnp
from jax.experimental import pallas as pl
from jax.experimental.pallas import tpu as pltpu


def _round_up(x: int, m: int) -> int:
    return (x + m - 1) // m * m


def _cross_attention_avg_kernel(tar_ref, src_ref, osrc_ref, wg_ref, segsum_ref,
                                expand_ref, wvs_ref, ctx_ref, attn_ref, *,
                                num_slots):
    """One row tile (TM frames).

    tar_ref    : (TM, H)        native dtype
    src_ref    : (TM, S*H)      native dtype (slot-major along lanes)
    osrc_ref   : (TM, S*H)      native dtype
    wg_ref     : (H, S*H)       f32, W_qk/sqrt(H) tiled S times
    segsum_ref : (S*H, Sp)      f32, per-slot segment-sum matrix (lanes >= S zero)
    expand_ref : (Sp, S*H)      f32, broadcast-attn-over-slot matrix
    wvs_ref    : (S*H, H)       f32, Wv^T stacked S times
    ctx_ref    : (TM, H)        context output
    attn_ref   : (TM, Sp)       lane-dense attention output (lanes >= S are 0)
    """
    S = num_slots
    f32 = jnp.float32

    tar = tar_ref[...].astype(f32)                                   # (TM, H)
    src = src_ref[...].astype(f32)                                   # (TM, S*H)
    osrc = osrc_ref[...].astype(f32)                                 # (TM, S*H)

    # (a) g tiled across slots: one MXU call.
    g_tiled = jnp.dot(tar, wg_ref[...], preferred_element_type=f32)  # (TM, S*H)

    # (b) per-slot scores via constant segment-sum matmul -> lane-dense (TM, Sp).
    scores = jnp.dot(src * g_tiled, segsum_ref[...],
                     preferred_element_type=f32)                     # (TM, Sp)

    # (c) numerically stable softmax over the slot axis (mask padded lanes).
    sp = attn_ref.shape[-1]
    lane = jax.lax.broadcasted_iota(jnp.int32, (1, sp), 1)
    scores = jnp.where(lane < S, scores, jnp.float32(-1e30))
    m = jnp.max(scores, axis=-1, keepdims=True)
    e = jnp.exp(scores - m)
    denom = jnp.sum(e, axis=-1, keepdims=True)
    attn = e / denom                                                 # (TM, Sp)
    attn_ref[...] = attn.astype(attn_ref.dtype)

    # (d) broadcast attn over each slot's H lanes, weight the original memory,
    #     apply the value projection post-sum (exact fold): one mul + one MXU call.
    attn_b = jnp.dot(attn, expand_ref[...], preferred_element_type=f32)   # (TM, S*H)
    ctx = jnp.dot(attn_b * osrc, wvs_ref[...], preferred_element_type=f32)
    ctx_ref[...] = ctx.astype(ctx_ref.dtype)


def cross_attention_avg(tar, src, ori_src, params, *,
                        vmem_budget_bytes=24 << 20, max_block_rows=2048):
    """CrossAttentionAVG forward. Returns (context (B,T,H), attn (B,T,S))."""
    B, T, S, H = src.shape
    assert tar.shape == (B, T, H)
    assert ori_src.shape == (B, T, S, H)
    assert S >= 1

    M = B * T
    Sp = _round_up(max(S, 1), 128)          # lane-dense attention output width

    # Contiguous (free) reshapes only; inputs stay in native dtype (no HBM copies).
    tar2 = tar.reshape(M, H)
    src2 = src.reshape(M, S * H)
    osrc2 = ori_src.reshape(M, S * H)

    # ---- tiny constant matrices (exact algebraic folds, bias=False module) ----
    hp = jax.lax.Precision.HIGHEST
    inv_scale = 1.0 / float(H) ** 0.5
    wq = params["wq"].astype(jnp.float32)
    wk = params["wk"].astype(jnp.float32)
    wv = params["wv"].astype(jnp.float32)
    w_qk = jnp.dot(wk.T, wq, precision=hp) * inv_scale              # (H, H)
    w_g = jnp.tile(w_qk, (1, S))                                     # (H, S*H)
    w_vstack = jnp.tile(wv.T, (S, 1))                                # (S*H, H)
    seg = jnp.repeat(jnp.arange(S, dtype=jnp.int32), H)              # (S*H,)
    segsum = (seg[:, None] == jnp.arange(Sp, dtype=jnp.int32)[None, :]
              ).astype(jnp.float32)                                  # (S*H, Sp)
    expand = segsum.T                                                # (Sp, S*H)

    ctx_dtype = tar.dtype
    attn_dtype = jnp.float32

    # ---- row-tile selection: VMEM-budget driven, v7x-aware, no padding ----
    bytes_in_row = (H * jnp.dtype(tar.dtype).itemsize
                    + S * H * jnp.dtype(src.dtype).itemsize
                    + S * H * jnp.dtype(ori_src.dtype).itemsize)
    bytes_out_row = (H * jnp.dtype(ctx_dtype).itemsize
                     + Sp * jnp.dtype(attn_dtype).itemsize)
    per_row_db = 2 * (bytes_in_row + bytes_out_row)        # double-buffered
    tm = min(max_block_rows, _round_up(M, 8))
    while tm > 8 and per_row_db * tm > vmem_budget_bytes:
        tm = max(8, _round_up(tm // 2, 8))
    # keep >= 2 grid steps so the "parallel" axis shards across v7x's 2 TCs
    if M > 8 and pl.cdiv(M, tm) < 2:
        tm = max(8, _round_up(pl.cdiv(M, 2), 8))
    grid = (pl.cdiv(M, tm),)                                # partial last block OK

    weights_bytes = 4 * int(w_g.size + segsum.size + expand.size + w_vstack.size)
    vmem_need = per_row_db * tm + 2 * weights_bytes + (2 << 20)
    vmem_limit = int(min(60 << 20, max(vmem_need, 32 << 20)))

    kernel = functools.partial(_cross_attention_avg_kernel, num_slots=S)

    cost = pl.CostEstimate(
        flops=int(2 * M * (H * S * H + 2 * S * H * Sp + S * H * H) + 4 * M * S * H),
        transcendentals=int(M * Sp),
        bytes_accessed=int(M * (bytes_in_row + bytes_out_row) + weights_bytes),
    )

    ctx, attn = pl.pallas_call(
        kernel,
        out_shape=(jax.ShapeDtypeStruct((M, H), ctx_dtype),
                   jax.ShapeDtypeStruct((M, Sp), attn_dtype)),
        grid_spec=pltpu.PrefetchScalarGridSpec(
            num_scalar_prefetch=0,
            grid=grid,
            in_specs=[
                pl.BlockSpec((tm, H), lambda i: (i, 0)),         # tar
                pl.BlockSpec((tm, S * H), lambda i: (i, 0)),     # src
                pl.BlockSpec((tm, S * H), lambda i: (i, 0)),     # ori_src
                pl.BlockSpec((H, S * H), lambda i: (0, 0)),      # w_g
                pl.BlockSpec((S * H, Sp), lambda i: (0, 0)),     # segsum
                pl.BlockSpec((Sp, S * H), lambda i: (0, 0)),     # expand
                pl.BlockSpec((S * H, H), lambda i: (0, 0)),      # w_vstack
            ],
            out_specs=(pl.BlockSpec((tm, H), lambda i: (i, 0)),
                       pl.BlockSpec((tm, Sp), lambda i: (i, 0))),
        ),
        compiler_params=pltpu.CompilerParams(
            dimension_semantics=("parallel",),
            vmem_limit_bytes=vmem_limit),
        cost_estimate=cost,
    )(tar2, src2, osrc2, w_g, segsum, expand, w_vstack)

    context = ctx.reshape(B, T, H)
    attn = attn[:, :S].reshape(B, T, S)
    return context, attn


def _reference(tar, src, ori_src, params):
    """Pure-JAX mirror of the PyTorch forward (projection order preserved)."""
    H = tar.shape[-1]
    hp = jax.lax.Precision.HIGHEST
    query = jnp.einsum("btsh,oh->btso", src, params["wq"], precision=hp)
    key = jnp.einsum("bth,oh->bto", tar, params["wk"], precision=hp)
    value = jnp.einsum("btsh,oh->btso", ori_src, params["wv"], precision=hp)
    key = key[:, :, None, :]                                      # unsqueeze(2)
    scores = jnp.matmul(query, jnp.swapaxes(key, -2, -1),
                        precision=hp) / (H ** 0.5)                # (B,T,S,1)
    attn = jax.nn.softmax(scores, axis=-2)                        # over S
    attn_t = jnp.swapaxes(attn, -2, -1)                           # (B,T,1,S)
    context = jnp.matmul(attn_t, value, precision=hp)[:, :, 0, :]  # squeeze(2)
    return context, attn_t[:, :, 0, :]


if __name__ == "__main__":
    root = jax.random.PRNGKey(0)
    kp, kt, ks, ko = jax.random.split(root, 4)
    B, T, S, H = 2, 8, 4, 32
    wscale = 1.0 / (H ** 0.5)
    kq, kk, kv = jax.random.split(kp, 3)
    params = {
        "wq": jax.random.normal(kq, (H, H), jnp.float32) * wscale,
        "wk": jax.random.normal(kk, (H, H), jnp.float32) * wscale,
        "wv": jax.random.normal(kv, (H, H), jnp.float32) * wscale,
    }
    tar = jax.random.normal(kt, (B, T, H), jnp.float32)
    src = jax.random.normal(ks, (B, T, S, H), jnp.float32)
    ori_src = jax.random.normal(ko, (B, T, S, H), jnp.float32)
    # NOTE: bf16 inputs also pass straight through (no wrapper casts); the
    # kernel casts tiles to f32 internally and accumulates in f32.

    context, attn = cross_attention_avg(tar, src, ori_src, params)
    context, attn = jax.block_until_ready((context, attn))

    ctx_ref, attn_ref_vals = _reference(tar, src, ori_src, params)
    assert context.shape == (B, T, H) and attn.shape == (B, T, S)
    assert bool(jnp.allclose(attn, attn_ref_vals, atol=1e-3, rtol=1e-3)), \
        "attention weights mismatch vs reference"
    assert bool(jnp.allclose(context, ctx_ref, atol=1e-3, rtol=1e-3)), \
        "context mismatch vs reference"

    print("KERNEL_OK")
</pallas_src>

<mosaic_0001>
module attributes {stable_mosaic.version = 11 : i64} {
  func.func @_cross_attention_avg_kernel(%arg0: i32, %arg1: memref<8x32xf32, #tpu.memory_space<vmem>>, %arg2: memref<8x128xf32, #tpu.memory_space<vmem>>, %arg3: memref<8x128xf32, #tpu.memory_space<vmem>>, %arg4: memref<32x128xf32, #tpu.memory_space<vmem>>, %arg5: memref<128x128xf32, #tpu.memory_space<vmem>>, %arg6: memref<128x128xf32, #tpu.memory_space<vmem>>, %arg7: memref<128x32xf32, #tpu.memory_space<vmem>>, %arg8: memref<8x32xf32, #tpu.memory_space<vmem>>, %arg9: memref<8x128xf32, #tpu.memory_space<vmem>>) attributes {dimension_semantics = [#tpu.dimension_semantics<parallel>], iteration_bounds = array<i64: 2>, scalar_prefetch = 0 : i64, scratch_operands = 0 : i64, tpu.core_type = #tpu.core_type<tc>, window_params = [{transform_indices = @transform_0, window_bounds = array<i64: 8, 32>}, {transform_indices = @transform_1, window_bounds = array<i64: 8, 128>}, {transform_indices = @transform_2, window_bounds = array<i64: 8, 128>}, {pipeline_mode = #tpu.pipeline_mode<synchronous>, transform_indices = @transform_3, window_bounds = array<i64: 32, 128>}, {pipeline_mode = #tpu.pipeline_mode<synchronous>, transform_indices = @transform_4, window_bounds = array<i64: 128, 128>}, {pipeline_mode = #tpu.pipeline_mode<synchronous>, transform_indices = @transform_5, window_bounds = array<i64: 128, 128>}, {pipeline_mode = #tpu.pipeline_mode<synchronous>, transform_indices = @transform_6, window_bounds = array<i64: 128, 32>}, {transform_indices = @transform_7, window_bounds = array<i64: 8, 32>}, {transform_indices = @transform_8, window_bounds = array<i64: 8, 128>}]} {
    %c0 = arith.constant 0 : index
    %c0_0 = arith.constant 0 : index
    %0 = vector.load %arg1[%c0, %c0_0] : memref<8x32xf32, #tpu.memory_space<vmem>>, vector<8x32xf32>
    %c0_1 = arith.constant 0 : index
    %c0_2 = arith.constant 0 : index
    %1 = vector.load %arg2[%c0_1, %c0_2] : memref<8x128xf32, #tpu.memory_space<vmem>>, vector<8x128xf32>
    %c0_3 = arith.constant 0 : index
    %c0_4 = arith.constant 0 : index
    %2 = vector.load %arg3[%c0_3, %c0_4] : memref<8x128xf32, #tpu.memory_space<vmem>>, vector<8x128xf32>
    %c0_5 = arith.constant 0 : index
    %c0_6 = arith.constant 0 : index
    %3 = vector.load %arg4[%c0_5, %c0_6] : memref<32x128xf32, #tpu.memory_space<vmem>>, vector<32x128xf32>
    %cst = arith.constant dense<0.000000e+00> : vector<8x128xf32>
    %4 = tpu.matmul %0, %3, %cst {dimension_numbers = #tpu.dot_dimension_numbers<[1], [0], [0], [1], [0, 0, 1, 1], [], []>} : vector<8x32xf32>, vector<32x128xf32>, vector<8x128xf32> -> vector<8x128xf32>
    %5 = arith.mulf %1, %4 : vector<8x128xf32>
    %c0_7 = arith.constant 0 : index
    %c0_8 = arith.constant 0 : index
    %6 = vector.load %arg5[%c0_7, %c0_8] : memref<128x128xf32, #tpu.memory_space<vmem>>, vector<128x128xf32>
    %cst_9 = arith.constant dense<0.000000e+00> : vector<8x128xf32>
    %7 = tpu.matmul %5, %6, %cst_9 {dimension_numbers = #tpu.dot_dimension_numbers<[1], [0], [0], [1], [0, 0, 1, 1], [], []>} : vector<8x128xf32>, vector<128x128xf32>, vector<8x128xf32> -> vector<8x128xf32>
    %8 = tpu.iota {dimensions = array<i32: 1>} : vector<1x128xi32>
    %c4_i32 = arith.constant 4 : i32
    %9 = vector.broadcast %c4_i32 : i32 to vector<1x128xi32>
    %10 = arith.cmpi slt, %8, %9 : vector<1x128xi32>
    %cst_10 = arith.constant -1.000000e+30 : f32
    %11 = vector.shape_cast %10 : vector<1x128xi1> to vector<1x128xi1>
    %12 = vector.broadcast %11 : vector<1x128xi1> to vector<8x128xi1>
    %13 = vector.broadcast %cst_10 : f32 to vector<8x128xf32>
    %14 = arith.select %12, %7, %13 : vector<8x128xi1>, vector<8x128xf32>
    %cst_11 = arith.constant dense<0xFF800000> : vector<8xf32>
    %15 = vector.multi_reduction <maximumf>, %14, %cst_11 [1] : vector<8x128xf32> to vector<8xf32>
    %16 = vector.shape_cast %15 : vector<8xf32> to vector<8x1xf32>
    %17 = vector.broadcast %16 : vector<8x1xf32> to vector<8x128xf32>
    %18 = arith.subf %14, %17 : vector<8x128xf32>
    %19 = math.exp %18 : vector<8x128xf32>
    %cst_12 = arith.constant dense<0.000000e+00> : vector<8xf32>
    %20 = vector.multi_reduction <add>, %19, %cst_12 [1] : vector<8x128xf32> to vector<8xf32>
    %21 = vector.shape_cast %20 : vector<8xf32> to vector<8x1xf32>
    %22 = vector.broadcast %21 : vector<8x1xf32> to vector<8x128xf32>
    %23 = arith.divf %19, %22 : vector<8x128xf32>
    %c0_13 = arith.constant 0 : index
    %c0_14 = arith.constant 0 : index
    %24 = vector.load %arg9[%c0_13, %c0_14] : memref<8x128xf32, #tpu.memory_space<vmem>>, vector<8x128xf32>
    tpu.vector_store %arg9[%c0_13, %c0_14], %23 {strides = array<i32>} : memref<8x128xf32, #tpu.memory_space<vmem>>, vector<8x128xf32>,
    %c0_15 = arith.constant 0 : index
    %c0_16 = arith.constant 0 : index
    %25 = vector.load %arg6[%c0_15, %c0_16] : memref<128x128xf32, #tpu.memory_space<vmem>>, vector<128x128xf32>
    %cst_17 = arith.constant dense<0.000000e+00> : vector<8x128xf32>
    %26 = tpu.matmul %23, %25, %cst_17 {dimension_numbers = #tpu.dot_dimension_numbers<[1], [0], [0], [1], [0, 0, 1, 1], [], []>} : vector<8x128xf32>, vector<128x128xf32>, vector<8x128xf32> -> vector<8x128xf32>
    %27 = arith.mulf %26, %2 : vector<8x128xf32>
    %c0_18 = arith.constant 0 : index
    %c0_19 = arith.constant 0 : index
    %28 = vector.load %arg7[%c0_18, %c0_19] : memref<128x32xf32, #tpu.memory_space<vmem>>, vector<128x32xf32>
    %cst_20 = arith.constant dense<0.000000e+00> : vector<8x32xf32>
    %29 = tpu.matmul %27, %28, %cst_20 {dimension_numbers = #tpu.dot_dimension_numbers<[1], [0], [0], [1], [0, 0, 1, 1], [], []>} : vector<8x128xf32>, vector<128x32xf32>, vector<8x32xf32> -> vector<8x32xf32>
    %c0_21 = arith.constant 0 : index
    %c0_22 = arith.constant 0 : index
    %30 = vector.load %arg8[%c0_21, %c0_22] : memref<8x32xf32, #tpu.memory_space<vmem>>, vector<8x32xf32>
    tpu.vector_store %arg8[%c0_21, %c0_22], %29 {strides = array<i32>} : memref<8x32xf32, #tpu.memory_space<vmem>>, vector<8x32xf32>,
    return
  }
  func.func @transform_0(%arg0: i32) -> (i32, i32) {
    %c0_i32 = arith.constant 0 : i32
    %c0_i32_0 = arith.constant 0 : i32
    return %arg0, %c0_i32 : i32, i32
  }
  func.func @transform_1(%arg0: i32) -> (i32, i32) {
    %c0_i32 = arith.constant 0 : i32
    %c0_i32_0 = arith.constant 0 : i32
    return %arg0, %c0_i32 : i32, i32
  }
  func.func @transform_2(%arg0: i32) -> (i32, i32) {
    %c0_i32 = arith.constant 0 : i32
    %c0_i32_0 = arith.constant 0 : i32
    return %arg0, %c0_i32 : i32, i32
  }
  func.func @transform_3(%arg0: i32) -> (i32, i32) {
    %c0_i32 = arith.constant 0 : i32
    %c0_i32_0 = arith.constant 0 : i32
    %c0_i32_1 = arith.constant 0 : i32
    return %c0_i32, %c0_i32_0 : i32, i32
  }
  func.func @transform_4(%arg0: i32) -> (i32, i32) {
    %c0_i32 = arith.constant 0 : i32
    %c0_i32_0 = arith.constant 0 : i32
    %c0_i32_1 = arith.constant 0 : i32
    return %c0_i32, %c0_i32_0 : i32, i32
  }
  func.func @transform_5(%arg0: i32) -> (i32, i32) {
    %c0_i32 = arith.constant 0 : i32
    %c0_i32_0 = arith.constant 0 : i32
    %c0_i32_1 = arith.constant 0 : i32
    return %c0_i32, %c0_i32_0 : i32, i32
  }
  func.func @transform_6(%arg0: i32) -> (i32, i32) {
    %c0_i32 = arith.constant 0 : i32
    %c0_i32_0 = arith.constant 0 : i32
    %c0_i32_1 = arith.constant 0 : i32
    return %c0_i32, %c0_i32_0 : i32, i32
  }
  func.func @transform_7(%arg0: i32) -> (i32, i32) {
    %c0_i32 = arith.constant 0 : i32
    %c0_i32_0 = arith.constant 0 : i32
    return %arg0, %c0_i32 : i32, i32
  }
  func.func @transform_8(%arg0: i32) -> (i32, i32) {
    %c0_i32 = arith.constant 0 : i32
    %c0_i32_0 = arith.constant 0 : i32
    return %arg0, %c0_i32 : i32, i32
  }
}

</mosaic_0001>

<bundles_post_ra>
// kernel: tpu_custom_call.1
= control target key start
LH: loop header
LB: loop body
LE: loop exit
PB: predicated region body
PF: predicated region fallthrough
CT: control target
= control target key end

     0   :  { %s1965_s0 = inlined_call_operand.hbm [shape: f32[16,32], index: 0, kind: input, shape index: {}]   ;;  %s1966_s1 = inlined_call_operand.hbm [shape: f32[16,128], index: 1, kind: input, shape index: {}]   ;;  %s1967_s2 = inlined_call_operand.hbm [shape: f32[16,128], index: 2, kind: input, shape index: {}]   ;;  %s1968_s3 = inlined_call_operand.vmem [shape: f32[32,128], index: 3, kind: input, shape index: {}]   ;;  %s1969_s4 = inlined_call_operand.vmem [shape: f32[128,128], index: 4, kind: input, shape index: {}]   ;;  %s1970_s5 = inlined_call_operand.hbm [shape: f32[128,128], index: 5, kind: input, shape index: {}]   ;;  %s1971_s6 = inlined_call_operand.vmem [shape: f32[128,32], index: 6, kind: input, shape index: {}]   ;;  %s1972_s7 = inlined_call_operand.hbm [shape: f32[16,32], index: 7, kind: output, shape index: {0}]   ;;  %s1973_s8 = inlined_call_operand.hbm [shape: f32[16,128], index: 8, kind: output, shape index: {1}]  }
   0x1   :  { %1990 = sst [smem:[#allocation24_spill]] %s1966_s1 }
   0x2   :  { %1991 = sst [smem:[#allocation25_spill]] %s1971_s6 }
   0x3   :  { %1992 = sst [smem:[#allocation26_spill]] %s1972_s7 }
   0x4   :  { %1993 = sst [smem:[#allocation27_spill]] %s1973_s8 }
   0x5   :  { %14 = vsyncpa [#allocation3], 0 }
   0x6   :  { %16 = vsyncpa [#allocation3 + $0x1], 0 }
   0x7   :  { %17 = vsyncpa [#allocation6], 0 }
   0x8   :  { %19 = vsyncpa [#allocation6 + $0x1], 0 }
   0x9   :  { %20 = vsyncpa [#allocation9], 0 }
   0xa   :  { %21 = vsyncpa [#allocation4], 0 }
   0xb   :  { %23 = vsyncpa [#allocation4 + $0x1], 0 }
   0xc   :  { %24 = vsyncpa [#allocation12], 0 }
   0xd   :  { %26 = vsyncpa [#allocation12 + $0x1], 0  ;;  %s1508_s27 = smov 0   ;;  %s1510_s28 = smov 0  }
   0xe   :  { %s1512_s29 = smov 0   ;;  %s1514_s30 = smov 0  }
   0xf LB: > { %1994 = sst [smem:[#allocation18_spill]] %s1439_s27  ;;  %s1529_s9 = sadd.s32 1, %s1451_s30   ;;  %s1451_s30 = sphi %s1514_s30, %s2025_s30   ;;  %s1447_s29 = sphi %s1512_s29, %s2029_s29   ;;  %s1443_s28 = sphi %s1510_s28, %s2028_s28   ;;  %s1439_s27 = sphi %s1508_s27, %s2027_s27  }
  0x10   : > { %1995 = sst [smem:[#allocation19_spill]] %s1451_s30  ;;  %s39_s10 = sadd.s32 1, %s1447_s29 }
  0x11   : > { %1996 = sst [smem:[#allocation20_spill]] %s1529_s9  ;;  %s36_s11 = ssub.s32 %s1451_s30, %s1529_s9 }
  0x12   : > { %p1975_p0 = scmp.ne.s32.totalorder %s1447_s29, %s1443_s28  ;;  %p37_p1 = scmp.eq.s32.totalorder %s36_s11, 0 }
  0x13   : > { %p47_p2 = scmp.eq.s32.totalorder %s1451_s30, 0  ;;  %p1195_p4 = scmp.lt.s32.totalorder %s1451_s30, 2 }
  0x14   : > { %s1540_s12 = scalar_select %p37_p1, %s1447_s29, %s39_s10  }
  0x15   : > { %p48_p5 = por %p47_p2, %p1975_p0  ;;  %s1974_s13 = sand.u32 1, %s1447_s29  }
  0x16   : > { %1997 = sst [smem:[#allocation21_spill]] %s1540_s12  ;;  %s1548_s14 = sshll.u32 %s1974_s13, 3 }
  0x17   : > { %s1551_s15 = sshll.u32 %s1451_s30, 7  ;;  %p1553_p6 = pnand %p1195_p4, %p48_p5 }
  0x18   : > { %s304_s17 = sand.u32 1, %s1451_s30   ;;  %s1999_s1 = sld [smem:[#allocation24_spill]] }
  0x19   : > { %s308_s21 = scalar_lea.vmem [#allocation5], %s1548_s14  ;;  %s1565_s23 = scalar_lea.sflag [#allocation6], %s304_s17 }
  0x1a   : > { %s315_s22 = sshll.u32 %s308_s21, 4  ;;  %p1571_p8 = pneg %p1553_p6  ;;  %s316_s22 = int_to_ptr.vmem [resolvable:$true] %s315_s22 }
  0x1e   : > { %s1562_s20 = scalar_lea.hbm %s1999_s1, %s1551_s15  ;;  %s1244_s11 = scalar_lea.hbm %s1999_s1, 256 }
  0x1f   : > { %s1239_s24 = scalar_lea.hbm %s1562_s20, 128  ;;  %p1245_p11 = scmp.lt.s32.totalorder %s1562_s20, %s1999_s1 }
  0x20   : > { %p1240_p7 = scmp.ne.s32.totalorder %s1562_s20, %s1239_s24  ;;  %p1246_p12 = scmp.lt.s32.totalorder %s1244_s11, %s1239_s24 }
  0x22   : > { %p1242_p9 = pnand %p1571_p8, %p1240_p7  ;;  %p1247_p13 = por %p1246_p12, %p1245_p11 }
  0x24   : > { %p1243_p10 = pneg %p1242_p9 }
  0x26   : > { %p1248_p1 = pnand %p1247_p13, %p1243_p10 }
  0x28   : > { %1251 = shalt.err (!%p1248_p1)
}
  0x29   : > { %s1252_s17 = scalar_lea.vmem %s316_s22, 128  ;;  %s1453_s21 = smov [#allocation5]  }
  0x2a   : > { %p1253_p2 = scmp.ne.s32.totalorder %s316_s22, %s1252_s17  ;;  %s1257_s13 = sshll.u32 %s1453_s21, 4  ;;  %s1258_s13 = int_to_ptr.vmem [resolvable:$false] %s1257_s13 }
  0x2b   : > { %s1259_s12 = scalar_lea.vmem %s1258_s13, 256  ;;  %p1260_p7 = scmp.lt.s32.totalorder %s316_s22, %s1258_s13 }
  0x2c   : > { %p1255_p4 = pnand %p1253_p2, %p1571_p8  ;;  %p1261_p9 = scmp.lt.s32.totalorder %s1259_s12, %s1252_s17 }
  0x2e   : > { %p1256_p5 = pneg %p1255_p4  ;;  %p1262_p3 = por %p1261_p9, %p1260_p7 }
  0x30   : > { %p1263_p0 = pnand %p1262_p3, %p1256_p5 }
  0x32   : > { %1266 = shalt.err (!%p1263_p0)
}
  0x33   : > { %1183 = dma.hbm_to_vmem [thread:$0]  (!%p1553_p6), %s1562_s20, 128, %s316_s22, %s1565_s23  }
  0x34   : > { %s1591_s24 = sadd.s32 4294967295, %s1451_s30   ;;  %s963_s12 = sadd.s32 4294967294, %s1451_s30  }
  0x35   : > { %p52_p0 = scmp.ne.s32.totalorder %s1443_s28, %s1439_s27  ;;  %p1979_p3 = scmp.eq.s32.totalorder %s1591_s24, 0 }
  0x36   : > { %p212_p10 = scmp.eq.s32.totalorder %s1591_s24, 1  ;;  %p218_p11 = scmp.eq.s32.totalorder %s963_s12, 1 }
  0x37   : > { %p1600_p12 = por %p1979_p3, %p52_p0  ;;  %p964_p13 = scmp.ge.s32.totalorder %s1451_s30, 1 }
  0x38   : > { %p2002_p1 = scmp.ne.s32.totalorder %s1447_s29, %s1443_s28  ;;  %p1612_p4 = por %p218_p11, %p52_p0 }
  0x39   : > { %s2001_s13 = scalar_select %p1600_p12, 1, 0 }
  0x3a   : > { %p1608_p2 = por %p212_p10, %p2002_p1  ;;  %p251_p5 = scmp.lt.s32.totalorder %s1451_s30, 3 }
  0x3b   : > { %s2005_s22 = scalar_select %p1612_p4, 1, 0 }
  0x3c   : > { %s2003_s20 = scalar_select %p1608_p2, 1, 0 }
  0x3d   : > { %2006 = sst [smem:[#allocation23_spill]] %s2005_s22  ;;  %p1617_p7 = pnand %p964_p13, %p251_p5 }
  0x3e   : > { %2004 = sst [smem:[#allocation22_spill]] %s2003_s20  ;;  %s1454_s10 = smov [#allocation8]  }
  0x3f   : > { %s2007_s26 = scalar_select %p1617_p7, 1, 0 }
  0x40   : > { %s269_s11 = sshll.u32 %s1454_s10, 4  ;;  %p1173_p9 = pneg %p1617_p7  ;;  %s270_s11 = int_to_ptr.vmem [resolvable:$true] %s269_s11 }
  0x41   : > { %s1627_s17 = scalar_lea.hbm %s1965_s0, %s1551_s15  ;;  %s290_s12 = scalar_lea.vmem [#allocation2], %s1548_s14 }
  0x42   : > { %p1631_p0 = pnand %p1173_p9, %p1979_p3  ;;  %s297_s1 = sshll.u32 %s290_s12, 4  ;;  %s1636_s1 = int_to_ptr.vmem [resolvable:$true] %s297_s1 }
  0x43   : > { %s1642_s30 = scalar_lea.hbm %s1967_s2, %s1551_s15  ;;  %s1278_s18 = scalar_lea.vmem %s270_s11, 2048 }
  0x44   : > { %p1269_p10 = pneg %p1631_p0  ;;  %p1279_p11 = scmp.ne.s32.totalorder %s270_s11, %s1278_s18 }
  0x45   : > { %p1286_p5 = scmp.lt.s32.totalorder %s270_s11, %s270_s11  ;;  %p1287_p9 = scmp.lt.s32.totalorder %s1278_s18, %s1278_s18 }
  0x46   : > { %p1281_p13 = pnand %p1279_p11, %p1269_p10 }
  0x47   : > { %p1288_p3 = por %p1287_p9, %p1286_p5 }
  0x48   : > { %p1282_p1 = pneg %p1281_p13 }
  0x4a   : > { %p1289_p4 = pnand %p1288_p3, %p1282_p1 }
  0x4c   : > { %1292 = shalt.err (!%p1289_p4)
}
  0x4d   : > { %s1455_s19 = smov 128   ;;  %s1456_s9 = smov 8  }
  0x4e   : > { %1176 = dma.hbm_to_vmem [thread:$0]  (!%p1631_p0), %s1970_s5, 2048, %s270_s11, [#allocation9], %s1455_s19, %s1455_s19, %s1456_s9  }
  0x4f   : > { %s2009_s10 = sand.u32 1, %s1447_s29   ;;  %s1293_s27 = scalar_lea.hbm %s1627_s17, 128 }
  0x50   : > { %s287_s22 = scalar_lea.sflag [#allocation3], %s2009_s10  ;;  %p1294_p10 = scmp.ne.s32.totalorder %s1627_s17, %s1293_s27 }
  0x51   : > { %s1298_s8 = scalar_lea.hbm %s1965_s0, 256  ;;  %p1299_p11 = scmp.lt.s32.totalorder %s1627_s17, %s1965_s0 }
  0x52   : > { %p1296_p3 = pnand %p1294_p10, %p1571_p8  ;;  %p1300_p13 = scmp.lt.s32.totalorder %s1298_s8, %s1293_s27 }
  0x54   : > { %p1297_p4 = pneg %p1296_p3  ;;  %p1301_p1 = por %p1300_p13, %p1299_p11 }
  0x56   : > { %p1302_p5 = pnand %p1301_p1, %p1297_p4 }
  0x58   : > { %1305 = shalt.err (!%p1302_p5)
}
  0x59   : > { %s1306_s11 = scalar_lea.vmem %s1636_s1, 128  ;;  %s1457_s21 = smov [#allocation2]  }
  0x5a   : > { %p1307_p0 = scmp.ne.s32.totalorder %s1636_s1, %s1306_s11  ;;  %s1311_s7 = sshll.u32 %s1457_s21, 4  ;;  %s1312_s7 = int_to_ptr.vmem [resolvable:$false] %s1311_s7 }
  0x5b   : > { %s1313_s19 = scalar_lea.vmem %s1312_s7, 256  ;;  %p1314_p3 = scmp.lt.s32.totalorder %s1636_s1, %s1312_s7 }
  0x5c   : > { %p1309_p9 = pnand %p1307_p0, %p1571_p8  ;;  %p1315_p2 = scmp.lt.s32.totalorder %s1313_s19, %s1306_s11 }
  0x5e   : > { %p1310_p10 = pneg %p1309_p9  ;;  %p1316_p12 = por %p1315_p2, %p1314_p3 }
  0x60   : > { %p1317_p7 = pnand %p1316_p12, %p1310_p10 }
  0x62   : > { %1320 = shalt.err (!%p1317_p7)
}
  0x63   : > { %1180 = dma.hbm_to_vmem [thread:$0]  (!%p1553_p6), %s1627_s17, 128, %s1636_s1, %s287_s22  }
  0x64   : > { %s326_s6 = scalar_lea.vmem [#allocation7], %s1548_s14  ;;  %s1321_s27 = scalar_lea.hbm %s1642_s30, 128 }
  0x65   : > { %s333_s8 = sshll.u32 %s326_s6, 4  ;;  %p1322_p4 = scmp.ne.s32.totalorder %s1642_s30, %s1321_s27  ;;  %s334_s8 = int_to_ptr.vmem [resolvable:$true] %s333_s8 }
  0x66   : > { %s1326_s15 = scalar_lea.hbm %s1967_s2, 256  ;;  %p1327_p12 = scmp.lt.s32.totalorder %s1642_s30, %s1967_s2 }
  0x67   : > { %p1324_p11 = pnand %p1322_p4, %p1571_p8  ;;  %p1328_p7 = scmp.lt.s32.totalorder %s1326_s15, %s1321_s27 }
  0x69   : > { %p1325_p2 = pneg %p1324_p11  ;;  %p1329_p13 = por %p1328_p7, %p1327_p12 }
  0x6b   : > { %p1330_p1 = pnand %p1329_p13, %p1325_p2 }
  0x6d   : > { %1333 = shalt.err (!%p1330_p1)
}
  0x6e   : > { %s1334_s1 = scalar_lea.vmem %s334_s8, 128  ;;  %s1458_s14 = smov [#allocation7]  }
  0x6f   : > { %p1335_p5 = scmp.ne.s32.totalorder %s334_s8, %s1334_s1  ;;  %s1339_s22 = sshll.u32 %s1458_s14, 4  ;;  %s1340_s22 = int_to_ptr.vmem [resolvable:$false] %s1339_s22 }
  0x70   : > { %s1341_s17 = scalar_lea.vmem %s1340_s22, 256  ;;  %p1342_p10 = scmp.lt.s32.totalorder %s334_s8, %s1340_s22 }
  0x71   : > { %p1337_p0 = pnand %p1335_p5, %p1571_p8  ;;  %p1343_p3 = scmp.lt.s32.totalorder %s1341_s17, %s1334_s1 }
  0x73   : > { %p1338_p9 = pneg %p1337_p0  ;;  %p1344_p4 = por %p1343_p3, %p1342_p10 }
  0x75   : > { %p1345_p11 = pnand %p1344_p4, %p1338_p9 }
  0x77   : > { %1348 = shalt.err (!%p1345_p11)
}
  0x78   : > { %1186 = dma.hbm_to_vmem [thread:$0]  (!%p1553_p6), %s1642_s30, 128, %s334_s8, %s1565_s23  }
  0x79   : > { %p2010_p2 = scmp.ne.s32.totalorder %s2007_s26, 0 }
  0x7a   : > { %s1694_s25 = sand.u32 (!%p2010_p2), 1, %s1443_s28   ;;  %p2011_p8 = scmp.ne.s32.totalorder (!%p2010_p2), %s2001_s13, 0 }
  0x7b   : > { %342 = sbr.rel (%p2010_p2) target bundleno = 1246 (0x4de), region = 48  ;;  %s1697_s18 = sshll.u32 (!%p2010_p2), %s1694_s25, 3 }
  0x7c   : > { %s345_s11 = scalar_lea.sflag (!%p2010_p2), [#allocation3], %s1694_s25  ;;  %s348_s21 = scalar_lea.vmem (!%p2010_p2), [#allocation2], %s1697_s18 }
  0x80   : > { %1418 = dma.done.wait (%p2011_p8), %s345_s11, 128  }
  0x81   : > { %1420 = vsyncadd (%p2011_p8), %s345_s11, 4294967168  ;;  %s353_s30 = sand.u32 1, %s1591_s24   ;;  %s357_s23 = scalar_lea.vmem [#allocation5], %s1697_s18 }
  0x82   : > { %s354_s16 = scalar_lea.sflag [#allocation6], %s353_s30 }
  0x83   : > { %1422 = dma.done.wait (%p2011_p8), %s354_s16, 256  }
  0x84   : > { %1424 = vsyncadd (%p2011_p8), %s354_s16, 4294967040  ;;  %s366_s26 = scalar_lea.vmem [#allocation7], %s1697_s18  ;;  %p2012_p6 = scmp.eq.s32.totalorder %s1591_s24, 0 }
  0x86   : > { %1426 = dma.done.wait (%p2012_p6), [#allocation9], 2048   ;;  %p2013_p12 = pmov %p2012_p6 }
  0x87   : > { %v1459_v0 = vmov 0.0   ;;  %vm1460_vm0 = vmmov 0   ;;  %v424_v1 = vld [vmem:[%s1968_s3 + $0x18] sm:$0xff]  ;;  %v423_v2 = vld [vmem:[%s1968_s3 + $0x10] sm:$0xff]  ;;  %v422_v4 = vld [vmem:[%s1968_s3 + $0x8] sm:$0xff]  ;;  %vm425_vm1 = vcmask 261120   ;;  %v586_v26 = vlaneseq }
  0x88   : > { %1428 = vsyncadd (%p2013_p12), [#allocation9], 4294965248  ;;  %1043 = vmatprep.subr.mxu0 %v1459_v0  ;;  %1051 = vmatprep.mubr.msk.f32.mxu0 %vm1460_vm0, %v1459_v0  ;;  %v515_v3 = vld [vmem:[%s1969_s4 + $0x78] sm:$0xff]  ;;  %v514_v5 = vld [vmem:[%s1969_s4 + $0x70] sm:$0xff]  ;;  %s2014_s6 = sld [smem:[#allocation25_spill]]  ;;  %s417_s1 = scalar_lea.vmem [#allocation11], %s1697_s18 }
  0x89   : > { %1054 = vmatprep.subr.mxu1 %v1459_v0  ;;  %1086 = vmatprep.mubr.msk.f32.mxu1 %vm1460_vm0, %v1459_v0  ;;  %v513_v6 = vld [vmem:[%s1969_s4 + $0x68] sm:$0xff]  ;;  %v421_v7 = vld [vmem:[%s1968_s3] sm:$0xff]  ;;  %v511_v10 = vld [vmem:[%s1969_s4 + $0x58] sm:$0xff]  ;;  %v587_v27 = vand.u32 127, %v586_v26  ;;  %s2015_s17 = sld [smem:[#allocation22_spill]]  ;;  %s983_s16 = sshll.u32 %s1591_s24, 7 }
  0x8a   : > { %1044 = vmatpush3.msra.mxu0 %v424_v1  ;;  %1055 = vmatpush3.msra.mxu1 %v515_v3  ;;  %v418_v8 = vld [vmem:[%s348_s21] sm:$0xff]  ;;  %v510_v11 = vld [vmem:[%s1969_s4 + $0x50] sm:$0xff]  ;;  %v507_v14 = vld [vmem:[%s1969_s4 + $0x38] sm:$0xff]  ;;  %s2016_s7 = sld [smem:[#allocation27_spill]]  ;;  %s808_s19 = sshll.u32 %s417_s1, 4  ;;  %s809_s19 = int_to_ptr.vmem [resolvable:$true] %s808_s19 }
  0x8b   : > { %1045 = vmatprep.subr.mxu0 %v1459_v0  ;;  %1056 = vmatprep.subr.mxu1 %v1459_v0  ;;  %v512_v9 = vld [vmem:[%s1969_s4 + $0x60] sm:$0xff]  ;;  %v509_v12 = vld [vmem:[%s1969_s4 + $0x48] sm:$0xff]  ;;  %v506_v15 = vld [vmem:[%s1969_s4 + $0x30] sm:$0xff]  ;;  %vm588_vm2 = vcmp.lt.s32.totalorder %v587_v27, 4  ;;  %s782_s8 = scalar_lea.sflag [#allocation12], %s1694_s25  ;;  %s1349_s27 = scalar_lea.vmem %s809_s19, 128 }
  0x8c   : > { %1046 = vmatpush3.msra.mxu0 %v423_v2  ;;  %1057 = vmatpush3.msra.mxu1 %v514_v5  ;;  %v508_v13 = vld [vmem:[%s1969_s4 + $0x40] sm:$0xff]  ;;  %v505_v16 = vld [vmem:[%s1969_s4 + $0x28] sm:$0xff]  ;;  %v503_v18 = vld [vmem:[%s1969_s4 + $0x18] sm:$0xff]  ;;  %p1350_p7 = scmp.ne.s32.totalorder %s809_s19, %s1349_s27  ;;  %s1461_s20 = smov [#allocation11]  }
  0x8d   : > { %1047 = vmatprep.subr.mxu0 %v1459_v0  ;;  %1058 = vmatprep.subr.mxu1 %v1459_v0  ;;  %v504_v17 = vld [vmem:[%s1969_s4 + $0x20] sm:$0xff]  ;;  %v502_v19 = vld [vmem:[%s1969_s4 + $0x10] sm:$0xff]  ;;  %v501_v20 = vld [vmem:[%s1969_s4 + $0x8] sm:$0xff] }
  0x8e   : > { %1048 = vmatpush3.msra.mxu0 %v422_v4  ;;  %1059 = vmatpush3.msra.mxu1 %v513_v6  ;;  %v500_v21 = vld [vmem:[%s1969_s4] sm:$0xff]  ;;  %v419_v22 = vld [vmem:[%s357_s23] sm:$0xff]  ;;  %v617_v31 = vld [vmem:[#allocation8 + $0x78] sm:$0xff] }
  0x8f   : > { %1049 = vmatprep.subr.mxu0 %v1459_v0  ;;  %1060 = vmatprep.subr.mxu1 %v1459_v0  ;;  %v616_v32 = vld [vmem:[#allocation8 + $0x70] sm:$0xff]  ;;  %v615_v33 = vld [vmem:[#allocation8 + $0x68] sm:$0xff]  ;;  %v614_v34 = vld [vmem:[#allocation8 + $0x60] sm:$0xff]  ;;  %p2017_p13 = scmp.ne.s32.totalorder %s2015_s17, 0 }
  0x90   : > { %1050 = vmatpush3.msra.mxu0 %v421_v7  ;;  %1061 = vmatpush3.msra.mxu1 %v512_v9  ;;  %v613_v35 = vld [vmem:[#allocation8 + $0x58] sm:$0xff]  ;;  %v612_v36 = vld [vmem:[#allocation8 + $0x50] sm:$0xff]  ;;  %v611_v37 = vld [vmem:[#allocation8 + $0x48] sm:$0xff]  ;;  %s806_s23 = scalar_lea.hbm %s2016_s7, %s983_s16 }
  0x91   : > { %1052 = vmatmul.mubr.msk.f32.vlgmr.msra.gmra.mxu0 %vm425_vm1, %v418_v8  ;;  %1062 = vmatprep.subr.mxu1 %v1459_v0  ;;  %v610_v38 = vld [vmem:[#allocation8 + $0x40] sm:$0xff]  ;;  %v609_v43 = vld [vmem:[#allocation8 + $0x38] sm:$0xff]  ;;  %v608_v44 = vld [vmem:[#allocation8 + $0x30] sm:$0xff]  ;;  %p1351_p1 = pnand %p1350_p7, %p2017_p13 }
  0x92   : > { %1089 = vmatprep.subr.mxu0 %v1459_v0  ;;  %1063 = vmatpush3.msra.mxu1 %v511_v10  ;;  %v607_v45 = vld [vmem:[#allocation8 + $0x28] sm:$0xff]  ;;  %v606_v46 = vld [vmem:[#allocation8 + $0x20] sm:$0xff]  ;;  %v605_v47 = vld [vmem:[#allocation8 + $0x18] sm:$0xff] }
  0x93   : > { %1121 = vmatprep.mubr.msk.f32.mxu0 %vm1460_vm0, %v1459_v0  ;;  %1064 = vmatprep.subr.mxu1 %v1459_v0  ;;  %v604_v48 = vld [vmem:[#allocation8 + $0x10] sm:$0xff]  ;;  %v603_v49 = vld [vmem:[#allocation8 + $0x8] sm:$0xff]  ;;  %v602_v50 = vld [vmem:[#allocation8] sm:$0xff]  ;;  %p1352_p5 = pneg %p1351_p1 }
  0x94   : > { %1065 = vmatpush3.msra.mxu1 %v510_v11  ;;  %1090 = vmatpush3.msra.mxu0 %v617_v31  ;;  %v704_v51 = vld [vmem:[%s2014_s6 + $0x78] sm:$0xff]  ;;  %v703_v52 = vld [vmem:[%s2014_s6 + $0x70] sm:$0xff]  ;;  %v702_v53 = vld [vmem:[%s2014_s6 + $0x68] sm:$0xff] }
  0x95   : > { %1066 = vmatprep.subr.mxu1 %v1459_v0  ;;  %1091 = vmatprep.subr.mxu0 %v1459_v0  ;;  %v701_v54 = vld [vmem:[%s2014_s6 + $0x60] sm:$0xff]  ;;  %v700_v55 = vld [vmem:[%s2014_s6 + $0x58] sm:$0xff]  ;;  %v699_v56 = vld [vmem:[%s2014_s6 + $0x50] sm:$0xff] }
  0x96   : > { %1067 = vmatpush3.msra.mxu1 %v509_v12  ;;  %1092 = vmatpush3.msra.mxu0 %v616_v32  ;;  %v698_v57 = vld [vmem:[%s2014_s6 + $0x48] sm:$0xff]  ;;  %v697_v58 = vld [vmem:[%s2014_s6 + $0x40] sm:$0xff]  ;;  %v696_v59 = vld [vmem:[%s2014_s6 + $0x38] sm:$0xff] }
  0x97   : > { %1068 = vmatprep.subr.mxu1 %v1459_v0  ;;  %1093 = vmatprep.subr.mxu0 %v1459_v0  ;;  %v695_v60 = vld [vmem:[%s2014_s6 + $0x30] sm:$0xff]  ;;  %v694_v61 = vld [vmem:[%s2014_s6 + $0x28] sm:$0xff]  ;;  %v693_v62 = vld [vmem:[%s2014_s6 + $0x20] sm:$0xff] }
  0x98   : > { %1069 = vmatpush3.msra.mxu1 %v508_v13  ;;  %1094 = vmatpush3.msra.mxu0 %v615_v33  ;;  %v692_v63 = vld [vmem:[%s2014_s6 + $0x18] sm:$0xff]  ;;  %v691_v1 = vld [vmem:[%s2014_s6 + $0x10] sm:$0xff]  ;;  %v690_v5 = vld [vmem:[%s2014_s6 + $0x8] sm:$0xff] }
  0x99   : > { %1070 = vmatprep.subr.mxu1 %v1459_v0  ;;  %1095 = vmatprep.subr.mxu0 %v1459_v0  ;;  %v689_v6 = vld [vmem:[%s2014_s6] sm:$0xff] }
  0x9a   : > { %1071 = vmatpush3.msra.mxu1 %v507_v14  ;;  %1096 = vmatpush3.msra.mxu0 %v614_v34  ;;  %v420_v7 = vld [vmem:[%s366_s26] sm:$0xff]  ;;  %s1353_s26 = sshll.u32 %s1461_s20, 4  ;;  %s1354_s26 = int_to_ptr.vmem [resolvable:$false] %s1353_s26 }
  0x9b   : > { %1072 = vmatprep.subr.mxu1 %v1459_v0  ;;  %1097 = vmatprep.subr.mxu0 %v1459_v0  ;;  %s1355_s9 = scalar_lea.vmem %s1354_s26, 256  ;;  %p1356_p0 = scmp.lt.s32.totalorder %s809_s19, %s1354_s26 }
  0x9c   : > { %1073 = vmatpush3.msra.mxu1 %v506_v15  ;;  %1098 = vmatpush3.msra.mxu0 %v613_v35  ;;  %p1357_p9 = scmp.lt.s32.totalorder %s1355_s9, %s1349_s27 }
  0x9d   : > { %1074 = vmatprep.subr.mxu1 %v1459_v0  ;;  %1099 = vmatprep.subr.mxu0 %v1459_v0 }
  0x9e   : > { %1075 = vmatpush3.msra.mxu1 %v505_v16  ;;  %1100 = vmatpush3.msra.mxu0 %v612_v36  ;;  %p1358_p10 = por %p1357_p9, %p1356_p0 }
  0x9f   : > { %1076 = vmatprep.subr.mxu1 %v1459_v0  ;;  %1101 = vmatprep.subr.mxu0 %v1459_v0 }
  0xa0   : > { %1077 = vmatpush3.msra.mxu1 %v504_v17  ;;  %1102 = vmatpush3.msra.mxu0 %v611_v37  ;;  %p1359_p3 = pnand %p1358_p10, %p1352_p5 }
  0xa1   : > { %1078 = vmatprep.subr.mxu1 %v1459_v0  ;;  %1103 = vmatprep.subr.mxu0 %v1459_v0 }
  0xa2   : > { %1079 = vmatpush3.msra.mxu1 %v503_v18  ;;  %1104 = vmatpush3.msra.mxu0 %v610_v38 }
  0xa3   : > { %1080 = vmatprep.subr.mxu1 %v1459_v0  ;;  %1105 = vmatprep.subr.mxu0 %v1459_v0 }
  0xa4   : > { %1081 = vmatpush3.msra.mxu1 %v502_v19  ;;  %1106 = vmatpush3.msra.mxu0 %v609_v43 }
  0xa5   : > { %1082 = vmatprep.subr.mxu1 %v1459_v0  ;;  %1107 = vmatprep.subr.mxu0 %v1459_v0 }
  0xa6   : > { %1083 = vmatpush3.msra.mxu1 %v501_v20  ;;  %1108 = vmatpush3.msra.mxu0 %v608_v44 }
  0xa7   : > { %1084 = vmatprep.subr.mxu1 %v1459_v0  ;;  %1109 = vmatprep.subr.mxu0 %v1459_v0 }
  0xa8   : > { %1085 = vmatpush3.msra.mxu1 %v500_v21  ;;  %1110 = vmatpush3.msra.mxu0 %v607_v45 }
  0xa9   : > { %1124 = vmatprep.subr.mxu1 %v1459_v0  ;;  %1111 = vmatprep.subr.mxu0 %v1459_v0 }
  0xaa   : > { %1112 = vmatpush3.msra.mxu0 %v606_v46 }
  0xab   : > { %1113 = vmatprep.subr.mxu0 %v1459_v0 }
  0xac   : > { %1114 = vmatpush3.msra.mxu0 %v605_v47 }
  0xad   : > { %1115 = vmatprep.subr.mxu0 %v1459_v0 }
  0xae   : > { %1116 = vmatpush3.msra.mxu0 %v604_v48 }
  0xaf   : > { %1117 = vmatprep.subr.mxu0 %v1459_v0 }
  0xb0   : > { %1118 = vmatpush3.msra.mxu0 %v603_v49 }
  0xb1   : > { %1119 = vmatprep.subr.mxu0 %v1459_v0 }
  0xb2   : > { %1120 = vmatpush3.msra.mxu0 %v602_v50 }
 0x151   : > { %v495_v23 = vpop.f32.mrf.mxu0 }
 0x152   : > { %v499_v24 = vmul.f32 %v495_v23, %v419_v22 }
 0x153   : > { %v1053_v25 = vpop.f32.mrf.mxu0 }
 0x154   : > { %1087 = vmatmul.mubr.f32.vlgmr.msra.gmra.mxu1 %v499_v24 }
 0x155   : > { %1156 = vmatprep.mubr.msk.f32.mxu1 %vm1460_vm0, %v1459_v0  ;;  %1125 = vmatpush3.msra.mxu1 %v704_v51 }
 0x156   : > { %1126 = vmatprep.subr.mxu1 %v1459_v0 }
 0x157   : > { %1127 = vmatpush3.msra.mxu1 %v703_v52 }
 0x158   : > { %1128 = vmatprep.subr.mxu1 %v1459_v0 }
 0x159   : > { %1129 = vmatpush3.msra.mxu1 %v702_v53 }
 0x15a   : > { %1130 = vmatprep.subr.mxu1 %v1459_v0 }
 0x15b   : > { %1131 = vmatpush3.msra.mxu1 %v701_v54 }
 0x15c   : > { %1132 = vmatprep.subr.mxu1 %v1459_v0 }
 0x15d   : > { %1133 = vmatpush3.msra.mxu1 %v700_v55 }
 0x15e   : > { %1134 = vmatprep.subr.mxu1 %v1459_v0 }
 0x15f   : > { %1135 = vmatpush3.msra.mxu1 %v699_v56 }
 0x160   : > { %1136 = vmatprep.subr.mxu1 %v1459_v0 }
 0x161   : > { %1137 = vmatpush3.msra.mxu1 %v698_v57 }
 0x162   : > { %1138 = vmatprep.subr.mxu1 %v1459_v0 }
 0x163   : > { %1139 = vmatpush3.msra.mxu1 %v697_v58 }
 0x164   : > { %1140 = vmatprep.subr.mxu1 %v1459_v0 }
 0x165   : > { %1141 = vmatpush3.msra.mxu1 %v696_v59 }
 0x166   : > { %1142 = vmatprep.subr.mxu1 %v1459_v0 }
 0x167   : > { %1143 = vmatpush3.msra.mxu1 %v695_v60 }
 0x168   : > { %1144 = vmatprep.subr.mxu1 %v1459_v0 }
 0x169   : > { %1145 = vmatpush3.msra.mxu1 %v694_v61 }
 0x16a   : > { %1146 = vmatprep.subr.mxu1 %v1459_v0 }
 0x16b   : > { %1147 = vmatpush3.msra.mxu1 %v693_v62 }
 0x16c   : > { %1148 = vmatprep.subr.mxu1 %v1459_v0 }
 0x16d   : > { %1149 = vmatpush3.msra.mxu1 %v692_v63 }
 0x16e   : > { %1150 = vmatprep.subr.mxu1 %v1459_v0 }
 0x16f   : > { %1151 = vmatpush3.msra.mxu1 %v691_v1 }
 0x170   : > { %1152 = vmatprep.subr.mxu1 %v1459_v0 }
 0x171   : > { %1153 = vmatpush3.msra.mxu1 %v690_v5 }
 0x172   : > { %1154 = vmatprep.subr.mxu1 %v1459_v0 }
 0x173   : > { %1155 = vmatpush3.msra.mxu1 %v689_v6 }
 0x214   : > { %v582_v28 = vpop.f32.mrf.mxu1 }
 0x215   : > { %v591_v29 = vsel %vm588_vm2, %v582_v28, -1e+30 }
 0x216   : > { %592 = vmax.xlane.f32.xlu0 %v591_v29  ;;  %v1088_v30 = vpop.f32.mrf.mxu1 }
 0x29f   : > { %v593_v39 = vpop.xlane.xlu0 %592 }
 0x2a0   : > { %v594_v40 = vsub.f32 %v591_v29, %v593_v39 }
 0x2a2   : > { %v595_v41 = vmul.f32 1.442695, %v594_v40 }
 0x2a4   : > { %1235 = vpow2.f32 %v595_v41 }
 0x2b1   : > { %v1819_v42 = vpop.eup %1235 }
 0x2b2   : > { %597 = vadd.xlane.f32.xlu0 %v1819_v42 }
 0x33b   : > { %v598_v2 = vpop.xlane.xlu0 %597 }
 0x33c   : > { %1237 = vrcp.f32 %v598_v2 }
 0x349   : > { %v1238_v3 = vpop.eup %1237 }
 0x34a   : > { %v600_v4 = vmul.f32 %v1238_v3, %v1819_v42 }
 0x34c   : > { %1122 = vmatmul.mubr.f32.vlgmr.msra.gmra.mxu0 %v600_v4  ;;  %601 = vst [vmem:[%s417_s1] sm:$0xff] %v600_v4 }
 0x40c   : > { %v684_v8 = vpop.f32.mrf.mxu0 }
 0x40d   : > { %v688_v9 = vmul.f32 %v684_v8, %v420_v7 }
 0x40e   : > { %v1123_v10 = vpop.f32.mrf.mxu0 }
 0x40f   : > { %1157 = vmatmul.mubr.f32.vlgmr.msra.gmra.mxu1 %v688_v9 }
 0x410   : > { %1362 = shalt.err (!%p1359_p3)
}
 0x411   : > { %s1363_s15 = scalar_lea.hbm %s806_s23, 128  ;;  %s1367_s1 = scalar_lea.hbm %s2016_s7, 256 }
 0x412   : > { %p1364_p4 = scmp.ne.s32.totalorder %s806_s23, %s1363_s15  ;;  %p1368_p8 = scmp.lt.s32.totalorder %s806_s23, %s2016_s7 }
 0x413   : > { %p1369_p6 = scmp.lt.s32.totalorder %s1367_s1, %s1363_s15 }
 0x414   : > { %p1365_p11 = pnand %p1364_p4, %p2017_p13 }
 0x415   : > { %p1370_p12 = por %p1369_p6, %p1368_p8 }
 0x416   : > { %p1366_p2 = pneg %p1365_p11 }
 0x418   : > { %p1371_p7 = pnand %p1370_p12, %p1366_p2 }
 0x41a   : > { %1374 = shalt.err (!%p1371_p7)
}
 0x41b   : > { %1170 = dma.vmem_to_hbm [thread:$0]  (%p2017_p13), %s809_s19, 128, %s806_s23, %s782_s8  }
 0x41c   : > { %s410_s11 = scalar_lea.vmem [#allocation10], %s1697_s18  ;;  %s2018_s27 = sld [smem:[#allocation26_spill]] }
 0x41d   : > { %s795_s30 = sshll.u32 %s410_s11, 4  ;;  %s777_s9 = scalar_lea.sflag [#allocation4], %s1694_s25  ;;  %s1923_s30 = int_to_ptr.vmem [resolvable:$true] %s795_s30 }
 0x41e   : > { %s1375_s15 = scalar_lea.vmem %s1923_s30, 128  ;;  %s1462_s24 = smov [#allocation10]  }
 0x41f   : > { %p1376_p1 = scmp.ne.s32.totalorder %s1923_s30, %s1375_s15  ;;  %s1379_s18 = sshll.u32 %s1462_s24, 4  ;;  %s1380_s18 = int_to_ptr.vmem [resolvable:$false] %s1379_s18 }
 0x420   : > { %p1382_p9 = scmp.lt.s32.totalorder %s1923_s30, %s1380_s18 }
 0x421   : > { %p1377_p5 = pnand %p1376_p1, %p2017_p13 }
 0x422   : > { %s2019_s20 = smov %s2018_s27  ;;  %s1921_s26 = scalar_lea.hbm %s2018_s27, %s983_s16 }
 0x423   : > { %p1378_p0 = pneg %p1377_p5  ;;  %s1381_s16 = scalar_lea.vmem %s1380_s18, 256 }
 0x424   : > { %p1383_p10 = scmp.lt.s32.totalorder %s1381_s16, %s1375_s15 }
 0x426   : > { %p1384_p3 = por %p1383_p10, %p1382_p9 }
 0x428   : > { %p1385_p4 = pnand %p1384_p3, %p1378_p0 }
 0x4cf   : > { %v771_v0 = vpop.f32.mrf.mxu1 }
 0x4d0   : > { %775 = vst.msk [vmem:[%s410_s11] sm:$0xff] %vm425_vm1, %v771_v0 }
 0x4d1   : > { %v1158_v11 = vpop.f32.mrf.mxu1 }
 0x4d2   : > { %1388 = shalt.err (!%p1385_p4)
}
 0x4d3   : > { %s1389_s23 = scalar_lea.hbm %s1921_s26, 128  ;;  %s1393_s8 = scalar_lea.hbm %s2019_s20, 256 }
 0x4d4   : > { %p1390_p11 = scmp.ne.s32.totalorder %s1921_s26, %s1389_s23  ;;  %p1394_p6 = scmp.lt.s32.totalorder %s1921_s26, %s2019_s20 }
 0x4d5   : > { %p1395_p12 = scmp.lt.s32.totalorder %s1393_s8, %s1389_s23 }
 0x4d6   : > { %p1391_p2 = pnand %p1390_p11, %p2017_p13 }
 0x4d7   : > { %p1396_p7 = por %p1395_p12, %p1394_p6 }
 0x4d8   : > { %p1392_p8 = pneg %p1391_p2 }
 0x4da   : > { %p1397_p1 = pnand %p1396_p7, %p1392_p8 }
 0x4dc   : > { %1400 = shalt.err (!%p1397_p1)
}
 0x4dd   : > { %1169 = dma.vmem_to_hbm [thread:$0]  (%p2017_p13), %s1923_s30, 128, %s1921_s26, %s777_s9  }
 0x4de PF: > { %s2020_s1 = sld [smem:[#allocation18_spill]] }
 0x4df   : > { %s2021_s14 = sld [smem:[#allocation23_spill]] }
 0x4e0   : > { %s2022_s22 = sld [smem:[#allocation19_spill]] }
 0x4e4   : > { %s820_s11 = sand.u32 1, %s2020_s1  }
 0x4e5   : > { %p2023_p5 = scmp.ne.s32.totalorder %s2021_s14, 0  ;;  %s821_s21 = scalar_lea.sflag [#allocation4], %s820_s11 }
 0x4e6   : > { %p2024_p0 = scmp.ge.s32.totalorder %s2022_s22, 2 }
 0x4e8   : > { %p1188_p9 = pnand %p2024_p0, %p2023_p5 }
 0x4ea   : > { %p1189_p10 = pneg %p1188_p9 }
 0x4ec   : > { %1430 = dma.done.wait (%p1189_p10), %s821_s21, 128  }
 0x4ed   : > { %1432 = vsyncadd (%p1189_p10), %s821_s21, 4294967168  ;;  %s830_s13 = scalar_lea.sflag [#allocation12], %s820_s11 }
 0x4ee   : > { %1434 = dma.done.wait (%p1189_p10), %s830_s13, 128  }
 0x4ef   : > { %1436 = vsyncadd (%p1189_p10), %s830_s13, 4294967168  ;;  %s2025_s30 = sld [smem:[#allocation20_spill]]  ;;  %s2027_s27 = smov %s1443_s28 }
 0x4f0   : > { %s2026_s17 = sld [smem:[#allocation21_spill]]  ;;  %s2028_s28 = smov %s1447_s29 }
 0x4f5   : > { %p29_p13 = scmp.ge.s32.totalorder %s2025_s30, 4  }
 0x4f6   : > { %s2029_s29 = smov %s2026_s17 }
 0x4f7   :  { %31 = sbr.rel (!%p29_p13) target bundleno = 15 (0xf), region = 138 }
 0x4fc   :  { %835 = vsyncpa [#allocation3], 1 }
 0x4fd   :  { %837 = vsyncpa [#allocation3 + $0x1], 1 }
 0x4fe   :  { %838 = vsyncpa [#allocation6], 1 }
 0x4ff   :  { %840 = vsyncpa [#allocation6 + $0x1], 1 }
 0x500   :  { %841 = vsyncpa [#allocation9], 1 }
 0x501   :  { %842 = vsyncpa [#allocation4], 1 }
 0x502   :  { %844 = vsyncpa [#allocation4 + $0x1], 1 }
 0x503   :  { %845 = vsyncpa [#allocation12], 1 }
 0x504   :  { %847 = vsyncpa [#allocation12 + $0x1], 1 }

</bundles_post_ra>
